<compile_context>
chip_gen: v5e
topology: v5e:2x2
jax: 0.10.0
libtpu: 0.0.40
codegen_flags: <defaults>
</compile_context>

<pallas_src>
import jax
import jax.numpy as jnp
from jax.experimental import pallas as pl
from jax.experimental.pallas import tpu as pltpu


def _fusion_kernel(hist_ref, cur_ref, w_ref, b_ref, out_ref):
    """One (C, TS) channel-major tile of the fused dual-flow computation.

    hist_ref, cur_ref : (C_in, TS)     channels on sublanes, spatial on lanes
    w_ref             : (C_half, C_in) 1x1 conv weight with BN scale folded in
    b_ref             : (C_half, 1)    folded BN shift (bias)
    out_ref           : (C_out, TS)    C_out = 2 * C_half = C_in
    """
    w = w_ref[...]                                   # f32
    b = b_ref[...]                                   # f32
    c_half = w_ref.shape[0]

    cur = cur_ref[...].astype(jnp.float32)           # reused as input AND residual

    def branch(x_f32):
        # 1x1 conv == (C_half, C_in) @ (C_in, TS) matmul, BN already folded.
        y = jnp.dot(w, x_f32, preferred_element_type=jnp.float32) + b
        return y * jax.nn.sigmoid(y)                 # SiLU

    # out = concat([hist_branch, cur_branch], channel) + cur, written as two
    # sub-slice stores (c_half is a multiple of 8 -> tile-aligned sublane slices).
    out_ref[:c_half, :] = (branch(hist_ref[...].astype(jnp.float32))
                           + cur[:c_half, :]).astype(out_ref.dtype)
    out_ref[c_half:, :] = (branch(cur)
                           + cur[c_half:, :]).astype(out_ref.dtype)


def _pick_spatial_tile(hw, cap=2048):
    """Largest lane-dense spatial tile: full H*W if small, else the biggest
    multiple of 128 that divides H*W (capped for VMEM headroom on v7x)."""
    if hw <= cap:
        return hw
    best = None
    t = 128
    while t <= cap:
        if hw % t == 0:
            best = t
        t += 128
    return best if best is not None else hw


def dual_flow_fusion(history_feature, cur_feature, conv_w, bn_scale, bn_shift,
                     *, spatial_tile=None):
    """history_feature, cur_feature: NCHW arrays of identical shape.

    conv_w   : (C_half, C_in) PyTorch-style 1x1 conv weight (squeezed).
    bn_scale : (C_half,) folded BN scale = gamma / sqrt(var + eps)
    bn_shift : (C_half,) folded BN shift = beta - mean * scale

    Returns (fused_feature_NCHW, student_feature_NCHW).
    """
    B, C_in, H, W = cur_feature.shape
    C_half = conv_w.shape[0]
    C_out = 2 * C_half
    assert C_out == C_in, "residual add requires OUTPUT_CHANNELS == input_channels"
    HW = H * W

    TS = _pick_spatial_tile(HW) if spatial_tile is None else spatial_tile
    assert HW % TS == 0, "H*W must divide the spatial tile"

    # Free reshapes: NCHW is already channel-major, contiguous in H*W.
    hist = history_feature.reshape(B, C_in, HW)
    cur = cur_feature.reshape(B, C_in, HW)

    # Fold BN into the conv: y*scale + shift == (scale*W) x + shift.
    w_folded = (bn_scale[:, None] * conv_w).astype(jnp.float32)    # (C_half, C_in)
    b_folded = bn_shift.reshape(C_half, 1).astype(jnp.float32)     # (C_half, 1)

    out = pl.pallas_call(
        _fusion_kernel,
        out_shape=jax.ShapeDtypeStruct((B, C_out, HW), cur_feature.dtype),
        grid_spec=pltpu.PrefetchScalarGridSpec(
            num_scalar_prefetch=0,
            grid=(B, HW // TS),
            in_specs=[
                pl.BlockSpec((None, C_in, TS), lambda b, s: (b, 0, s)),  # history
                pl.BlockSpec((None, C_in, TS), lambda b, s: (b, 0, s)),  # current (+residual)
                pl.BlockSpec((C_half, C_in), lambda b, s: (0, 0)),       # folded conv weight
                pl.BlockSpec((C_half, 1), lambda b, s: (0, 0)),          # folded BN shift
            ],
            out_specs=pl.BlockSpec((None, C_out, TS), lambda b, s: (b, 0, s)),
        ),
        compiler_params=pltpu.CompilerParams(
            dimension_semantics=("parallel", "parallel")),
    )(hist, cur, w_folded, b_folded)

    fused = out.reshape(B, C_out, H, W)
    student_feature = cur_feature   # batch_dict['student_feature'] = cur_feature
    return fused, student_feature


def _reference(history_feature, cur_feature, conv_w, bn_scale, bn_shift):
    """Pure-JAX reference mirroring the PyTorch forward."""
    def token_branch(x):  # NCHW
        y = jnp.einsum('bchw,oc->bohw', x, conv_w)                 # 1x1 conv, no bias
        y = y * bn_scale[None, :, None, None] + bn_shift[None, :, None, None]
        return y * jax.nn.sigmoid(y)                               # SiLU

    dyn = jnp.concatenate([token_branch(history_feature),
                           token_branch(cur_feature)], axis=1)
    return dyn + cur_feature


if __name__ == "__main__":
    # Small shapes consistent with the module: NCHW BEV feature maps.
    B, C_in, H, W = 2, 32, 16, 16
    C_out = C_in            # OUTPUT_CHANNELS defaults to input_channels
    C_half = C_out // 2

    key = jax.random.PRNGKey(0)
    k1, k2, k3, k4, k5, k6, k7 = jax.random.split(key, 7)

    cur_feature = jax.random.normal(k1, (B, C_in, H, W), jnp.float32)
    history_feature = jax.random.normal(k2, (B, C_in, H, W), jnp.float32)

    # token_branch_conv = BaseConv(C_in, C_half, ksize=1): Conv2d(bias=False)+BN+SiLU.
    conv_w = 0.1 * jax.random.normal(k3, (C_half, C_in), jnp.float32)  # (out, in) 1x1
    bn_gamma = 1.0 + 0.05 * jax.random.normal(k4, (C_half,), jnp.float32)
    bn_beta = 0.05 * jax.random.normal(k5, (C_half,), jnp.float32)
    bn_mean = 0.05 * jax.random.normal(k6, (C_half,), jnp.float32)
    bn_var = jnp.abs(1.0 + 0.05 * jax.random.normal(k7, (C_half,), jnp.float32))
    eps = 1e-5
    bn_scale = bn_gamma / jnp.sqrt(bn_var + eps)
    bn_shift = bn_beta - bn_mean * bn_scale

    fused, student = dual_flow_fusion(history_feature, cur_feature,
                                      conv_w, bn_scale, bn_shift)
    fused = jax.block_until_ready(fused)
    student = jax.block_until_ready(student)

    ref = _reference(history_feature, cur_feature, conv_w, bn_scale, bn_shift)
    assert fused.shape == (B, C_out, H, W)
    assert jnp.allclose(fused, ref, atol=1e-5, rtol=1e-5)
    assert jnp.array_equal(student, cur_feature)

    print("KERNEL_OK")
</pallas_src>

<mosaic_0001>
module attributes {stable_mosaic.version = 11 : i64} {
  func.func @_fusion_kernel(%arg0: i32, %arg1: i32, %arg2: memref<1x32x256xf32, #tpu.memory_space<vmem>>, %arg3: memref<1x32x256xf32, #tpu.memory_space<vmem>>, %arg4: memref<16x32xf32, #tpu.memory_space<vmem>>, %arg5: memref<16x1xf32, #tpu.memory_space<vmem>>, %arg6: memref<1x32x256xf32, #tpu.memory_space<vmem>>) attributes {dimension_semantics = [#tpu.dimension_semantics<parallel>, #tpu.dimension_semantics<parallel>], iteration_bounds = array<i64: 2, 1>, scalar_prefetch = 0 : i64, scratch_operands = 0 : i64, tpu.core_type = #tpu.core_type<tc>, window_params = [{transform_indices = @transform_0, window_bounds = array<i64: 1, 32, 256>}, {transform_indices = @transform_1, window_bounds = array<i64: 1, 32, 256>}, {pipeline_mode = #tpu.pipeline_mode<synchronous>, transform_indices = @transform_2, window_bounds = array<i64: 16, 32>}, {pipeline_mode = #tpu.pipeline_mode<synchronous>, transform_indices = @transform_3, window_bounds = array<i64: 16, 1>}, {transform_indices = @transform_4, window_bounds = array<i64: 1, 32, 256>}]} {
    %c0 = arith.constant 0 : index
    %c0_0 = arith.constant 0 : index
    %0 = vector.load %arg4[%c0, %c0_0] : memref<16x32xf32, #tpu.memory_space<vmem>>, vector<16x32xf32>
    %c0_1 = arith.constant 0 : index
    %c0_2 = arith.constant 0 : index
    %1 = vector.load %arg5[%c0_1, %c0_2] : memref<16x1xf32, #tpu.memory_space<vmem>>, vector<16x1xf32>
    %c0_3 = arith.constant 0 : index
    %c0_4 = arith.constant 0 : index
    %c0_5 = arith.constant 0 : index
    %2 = vector.load %arg3[%c0_3, %c0_4, %c0_5] : memref<1x32x256xf32, #tpu.memory_space<vmem>>, vector<1x32x256xf32>
    %3 = vector.shape_cast %2 : vector<1x32x256xf32> to vector<32x256xf32>
    %c0_6 = arith.constant 0 : index
    %c0_7 = arith.constant 0 : index
    %c0_8 = arith.constant 0 : index
    %4 = vector.load %arg2[%c0_6, %c0_7, %c0_8] : memref<1x32x256xf32, #tpu.memory_space<vmem>>, vector<1x32x256xf32>
    %5 = vector.shape_cast %4 : vector<1x32x256xf32> to vector<32x256xf32>
    %cst = arith.constant dense<0.000000e+00> : vector<16x256xf32>
    %6 = tpu.matmul %0, %5, %cst {dimension_numbers = #tpu.dot_dimension_numbers<[1], [0], [0], [1], [0, 0, 1, 1], [], []>} : vector<16x32xf32>, vector<32x256xf32>, vector<16x256xf32> -> vector<16x256xf32>
    %7 = vector.broadcast %1 : vector<16x1xf32> to vector<16x256xf32>
    %8 = arith.addf %6, %7 : vector<16x256xf32>
    %9 = arith.negf %8 : vector<16x256xf32>
    %10 = math.exp %9 : vector<16x256xf32>
    %cst_9 = arith.constant 1.000000e+00 : f32
    %11 = vector.broadcast %cst_9 : f32 to vector<16x256xf32>
    %12 = arith.addf %11, %10 : vector<16x256xf32>
    %13 = arith.divf %11, %12 : vector<16x256xf32>
    %14 = arith.mulf %8, %13 : vector<16x256xf32>
    %15 = vector.extract_strided_slice %3 {offsets = [0, 0], sizes = [16, 256], strides = [1, 1]} : vector<32x256xf32> to vector<16x256xf32>
    %16 = arith.addf %14, %15 : vector<16x256xf32>
    %c0_10 = arith.constant 0 : index
    %c0_11 = arith.constant 0 : index
    %c0_12 = arith.constant 0 : index
    %17 = vector.load %arg6[%c0_10, %c0_11, %c0_12] : memref<1x32x256xf32, #tpu.memory_space<vmem>>, vector<1x16x256xf32>
    %18 = vector.shape_cast %17 : vector<1x16x256xf32> to vector<16x256xf32>
    %19 = vector.shape_cast %16 : vector<16x256xf32> to vector<1x16x256xf32>
    tpu.vector_store %arg6[%c0_10, %c0_11, %c0_12], %19 {strides = array<i32>} : memref<1x32x256xf32, #tpu.memory_space<vmem>>, vector<1x16x256xf32>,
    %cst_13 = arith.constant dense<0.000000e+00> : vector<16x256xf32>
    %20 = tpu.matmul %0, %3, %cst_13 {dimension_numbers = #tpu.dot_dimension_numbers<[1], [0], [0], [1], [0, 0, 1, 1], [], []>} : vector<16x32xf32>, vector<32x256xf32>, vector<16x256xf32> -> vector<16x256xf32>
    %21 = vector.broadcast %1 : vector<16x1xf32> to vector<16x256xf32>
    %22 = arith.addf %20, %21 : vector<16x256xf32>
    %23 = arith.negf %22 : vector<16x256xf32>
    %24 = math.exp %23 : vector<16x256xf32>
    %cst_14 = arith.constant 1.000000e+00 : f32
    %25 = vector.broadcast %cst_14 : f32 to vector<16x256xf32>
    %26 = arith.addf %25, %24 : vector<16x256xf32>
    %27 = arith.divf %25, %26 : vector<16x256xf32>
    %28 = arith.mulf %22, %27 : vector<16x256xf32>
    %29 = vector.extract_strided_slice %3 {offsets = [16, 0], sizes = [16, 256], strides = [1, 1]} : vector<32x256xf32> to vector<16x256xf32>
    %30 = arith.addf %28, %29 : vector<16x256xf32>
    %c0_15 = arith.constant 0 : index
    %c16 = arith.constant 16 : index
    %c0_16 = arith.constant 0 : index
    %31 = vector.load %arg6[%c0_15, %c16, %c0_16] : memref<1x32x256xf32, #tpu.memory_space<vmem>>, vector<1x16x256xf32>
    %32 = vector.shape_cast %31 : vector<1x16x256xf32> to vector<16x256xf32>
    %33 = vector.shape_cast %30 : vector<16x256xf32> to vector<1x16x256xf32>
    tpu.vector_store %arg6[%c0_15, %c16, %c0_16], %33 {strides = array<i32>} : memref<1x32x256xf32, #tpu.memory_space<vmem>>, vector<1x16x256xf32>,
    return
  }
  func.func @transform_0(%arg0: i32, %arg1: i32) -> (i32, i32, i32) {
    %c0_i32 = arith.constant 0 : i32
    %c0_i32_0 = arith.constant 0 : i32
    return %arg0, %c0_i32, %arg1 : i32, i32, i32
  }
  func.func @transform_1(%arg0: i32, %arg1: i32) -> (i32, i32, i32) {
    %c0_i32 = arith.constant 0 : i32
    %c0_i32_0 = arith.constant 0 : i32
    return %arg0, %c0_i32, %arg1 : i32, i32, i32
  }
  func.func @transform_2(%arg0: i32, %arg1: i32) -> (i32, i32) {
    %c0_i32 = arith.constant 0 : i32
    %c0_i32_0 = arith.constant 0 : i32
    %c0_i32_1 = arith.constant 0 : i32
    return %c0_i32, %c0_i32_0 : i32, i32
  }
  func.func @transform_3(%arg0: i32, %arg1: i32) -> (i32, i32) {
    %c0_i32 = arith.constant 0 : i32
    %c0_i32_0 = arith.constant 0 : i32
    %c0_i32_1 = arith.constant 0 : i32
    return %c0_i32, %c0_i32_0 : i32, i32
  }
  func.func @transform_4(%arg0: i32, %arg1: i32) -> (i32, i32, i32) {
    %c0_i32 = arith.constant 0 : i32
    %c0_i32_0 = arith.constant 0 : i32
    return %arg0, %c0_i32, %arg1 : i32, i32, i32
  }
}

</mosaic_0001>

<bundles_post_ra>
// kernel: tpu_custom_call.1
= control target key start
LH: loop header
LB: loop body
LE: loop exit
PB: predicated region body
PF: predicated region fallthrough
CT: control target
= control target key end

     0   :  { %s1362_s0 = inlined_call_operand.hbm [shape: f32[2,32,256], index: 0, kind: input, shape index: {}]   ;;  %s1363_s1 = inlined_call_operand.hbm [shape: f32[2,32,256], index: 1, kind: input, shape index: {}]   ;;  %s1364_s2 = inlined_call_operand.vmem [shape: f32[16,32], index: 2, kind: input, shape index: {}]   ;;  %s1365_s3 = inlined_call_operand.vmem [shape: f32[16,1], index: 3, kind: input, shape index: {}]   ;;  %s1366_s4 = inlined_call_operand.hbm [shape: f32[2,32,256], index: 4, kind: output, shape index: {}]  }
   0x1   :  { %1368 = sst [smem:[#allocation12_spill]] %s1362_s0 }
   0x2   :  { %9 = vsyncpa [#allocation3], 0 }
   0x3   :  { %11 = vsyncpa [#allocation3 + $0x1], 0 }
   0x4   :  { %12 = vsyncpa [#allocation6], 0 }
   0x5   :  { %14 = vsyncpa [#allocation6 + $0x1], 0 }
   0x6   :  { %15 = vsyncpa [#allocation4], 0 }
   0x7   :  { %17 = vsyncpa [#allocation4 + $0x1], 0  ;;  %s1042_s15 = smov 0   ;;  %s1044_s16 = smov 0  }
   0x8   :  { %s1046_s17 = smov 0   ;;  %s1048_s18 = smov 0  }
   0x9   :  { %s1050_s19 = smov 0   ;;  %s1052_s20 = smov 0  }
   0xa LB: > { %s721_s21 = sadd.s32 4294967295, %s1010_s20   ;;  %s722_s22 = sadd.s32 4294967294, %s1010_s20   ;;  %s1010_s20 = sphi %s1052_s20, %s23_s20   ;;  %s1006_s19 = sphi %s1050_s19, %s1389_s19   ;;  %s1002_s18 = sphi %s1048_s18, %s1388_s18   ;;  %s998_s17 = sphi %s1046_s17, %s1387_s17   ;;  %s994_s16 = sphi %s1044_s16, %s1386_s16   ;;  %s990_s15 = sphi %s1042_s15, %s1385_s15  }
   0xb   : > { %s35_s23 = sadd.s32 1, %s1006_s19  ;;  %s44_s24 = sadd.s32 1, %s998_s17 }
   0xc   : > { %p37_p0 = scmp.ge.s32.totalorder %s35_s23, 2  ;;  %p51_p1 = scmp.ne.s32.totalorder %s998_s17, %s994_s16 }
   0xd   : > { %p52_p2 = scmp.eq.s32.totalorder %s1010_s20, 0  ;;  %p57_p3 = scmp.ne.s32.totalorder %s994_s16, %s990_s15 }
   0xe   : > { %s1391_s23 = smov (%p37_p0, %s35_s23), 0  ;;  %p58_p5 = scmp.eq.s32.totalorder %s721_s21, 0 }
   0xf   : > { %1369 = sst [smem:[#allocation11_spill]] %s1391_s23  ;;  %p1083_p4 = por %p52_p2, %p51_p1 }
  0x10   : > { %s39_s26 = ssub.s32 %s1006_s19, %s1391_s23  ;;  %p153_p6 = scmp.eq.s32.totalorder %s721_s21, 1 }
  0x11   : > { %p42_p7 = scmp.eq.s32.totalorder %s39_s26, 0  ;;  %p1089_p8 = por %p58_p5, %p57_p3 }
  0x12   : > { %p1093_p9 = por %p153_p6, %p51_p1  ;;  %p159_p10 = scmp.eq.s32.totalorder %s722_s22, 1 }
  0x13   : > { %s1098_s29 = scalar_select %p42_p7, %s998_s17, %s44_s24  }
  0x14   : > { %p1100_p11 = por %p159_p10, %p57_p3  ;;  %p724_p12 = scmp.ge.s32.totalorder %s1010_s20, 2 }
  0x15   : > { %p776_p13 = scmp.lt.s32.totalorder %s1010_s20, 2  ;;  %s1107_s5 = sand.u32 1, %s998_s17  }
  0x16   : > { %s725_s6 = sshll.u32 %s1107_s5, 6  ;;  %s756_s7 = sshll.u32 %s1006_s19, 6 }
  0x17   : > { %s1374_s0 = sld [smem:[#allocation12_spill]]  ;;  %s189_s11 = scalar_lea.vmem [#allocation2], %s725_s6 }
  0x18   : > { %s199_s12 = sshll.u32 %s189_s11, 4  ;;  %p1116_p0 = pnand %p776_p13, %p1083_p4  ;;  %s200_s12 = int_to_ptr.vmem [resolvable:$true] %s199_s12 }
  0x19   : > { %p731_p1 = scmp.ge.s32.totalorder %s1010_s20, 1  ;;  %s186_s21 = scalar_lea.sflag [#allocation3], %s1107_s5 }
  0x1a   : > { %s1012_s22 = smov 256   ;;  %s1013_s24 = smov 16  }
  0x1b   : > { %p231_p2 = scmp.lt.s32.totalorder %s1010_s20, 3  ;;  %s220_s9 = scalar_lea.hbm %s1363_s1, %s756_s7 }
  0x1c   : > { %s213_s25 = scalar_lea.vmem [#allocation5], %s725_s6 }
  0x1d   : > { %s196_s10 = scalar_lea.hbm %s1374_s0, %s756_s7  ;;  %p232_p3 = pnand %p731_p1, %p231_p2 }
  0x1e   : > { %s197_s13 = sshll.u32 %s196_s10, 4  ;;  %s221_s10 = sshll.u32 %s220_s9, 4  ;;  %s198_s13 = int_to_ptr.hbm [resolvable:$true] %s197_s13  ;;  %s222_s10 = int_to_ptr.hbm [resolvable:$true] %s221_s10 }
  0x1f   : > { %768 = dma.hbm_to_vmem [thread:$0]  (!%p1116_p0), %s198_s13, 1024, %s200_s12, %s186_s21, %s1012_s22, %s1012_s22, %s1013_s24  }
  0x20   : > { %s223_s11 = sshll.u32 %s213_s25, 4  ;;  %s210_s0 = scalar_lea.sflag [#allocation6], %s1107_s5  ;;  %s224_s11 = int_to_ptr.vmem [resolvable:$true] %s223_s11 }
  0x21   : > { %771 = dma.hbm_to_vmem [thread:$0]  (!%p1116_p0), %s222_s10, 1024, %s224_s11, %s210_s0, %s1012_s22, %s1012_s22, %s1013_s24  }
  0x22   : > { %235 = sbr.rel (%p232_p3) target bundleno = 237 (0xed), region = 36  ;;  %s1132_s23 = sand.u32 (!%p232_p3), 1, %s994_s16  }
  0x23   : > { %s1135_s12 = sshll.u32 (!%p232_p3), %s1132_s23, 6  ;;  %s238_s7 = scalar_lea.sflag (!%p232_p3), [#allocation3], %s1132_s23 }
  0x24   : > { %s241_s13 = scalar_lea.vmem (!%p232_p3), [#allocation2], %s1135_s12 }
  0x27   : > { %977 = dma.done.wait (%p1089_p8), %s238_s7, 1024  }
  0x28   : > { %979 = vsyncadd (%p1089_p8), %s238_s7, 4294966272  ;;  %s248_s0 = scalar_lea.sflag [#allocation6], %s1132_s23  ;;  %s251_s5 = scalar_lea.vmem [#allocation5], %s1135_s12 }
  0x29   : > { %981 = dma.done.wait (%p1089_p8), %s248_s0, 1024  }
  0x2a   : > { %983 = vsyncadd (%p1089_p8), %s248_s0, 4294966272  ;;  %v1014_v0 = vmov 0   ;;  %v303_v1 = vld [vmem:[%s241_s13 + $0x30] sm:$0xff]  ;;  %v304_v2 = vld [vmem:[%s241_s13 + $0x38] sm:$0xff]  ;;  %vm315_vm0 = vcmask 261120   ;;  %s1269_s9 = scalar_lea.vmem [#allocation7], %s1135_s12 }
  0x2b   : > { %831 = vset.pattern.permute.xlu0 %v1014_v0  ;;  %v1149_v3 = vld [vmem:[%s251_s5 + $0x30] sm:$0xff]  ;;  %334 = vmatpush.msra.mxu0 %v303_v1  ;;  %v1151_v4 = vld [vmem:[%s251_s5 + $0x38] sm:$0xff]  ;;  %v301_v5 = vld [vmem:[%s241_s13 + $0x20] sm:$0xff]  ;;  %s758_s10 = sshll.u32 %s1002_s18, 6  ;;  %s605_s18 = sshll.u32 %s1269_s9, 4  ;;  %s606_s18 = int_to_ptr.vmem [resolvable:$true] %s605_s18 }
  0x2c   : > { %357 = vmatpush.msra.mxu1 %v304_v2  ;;  %v302_v6 = vld [vmem:[%s241_s13 + $0x28] sm:$0xff]  ;;  %468 = vmatpush.msra.mxu2 %v1149_v3  ;;  %v1155_v7 = vld [vmem:[%s251_s5 + $0x20] sm:$0xff]  ;;  %v299_v9 = vld [vmem:[%s241_s13 + $0x10] sm:$0xff]  ;;  %s604_s12 = scalar_lea.hbm %s1366_s4, %s758_s10  ;;  %s944_s14 = scalar_lea.hbm %s1366_s4, 128 }
  0x2d   : > { %491 = vmatpush.msra.mxu3 %v1151_v4  ;;  %v1157_v8 = vld [vmem:[%s251_s5 + $0x28] sm:$0xff]  ;;  %335 = vmatpush.msra.mxu0 %v301_v5  ;;  %v300_v10 = vld [vmem:[%s241_s13 + $0x18] sm:$0xff]  ;;  %v1159_v11 = vld [vmem:[%s251_s5 + $0x10] sm:$0xff]  ;;  %s607_s7 = sshll.u32 %s604_s12, 4  ;;  %s608_s7 = int_to_ptr.hbm [resolvable:$true] %s607_s7 }
  0x2e   : > { %358 = vmatpush.msra.mxu1 %v302_v6  ;;  %v1161_v12 = vld [vmem:[%s251_s5 + $0x18] sm:$0xff]  ;;  %469 = vmatpush.msra.mxu2 %v1155_v7  ;;  %v297_v13 = vld [vmem:[%s241_s13] sm:$0xff]  ;;  %v298_v14 = vld [vmem:[%s241_s13 + $0x8] sm:$0xff]  ;;  %s591_s13 = scalar_lea.sflag [#allocation4], %s1132_s23  ;;  %s938_s0 = sshra.s32 %s608_s7, 4  ;;  %s939_s0 = int_to_ptr.hbm [resolvable:$true] %s938_s0 }
  0x2f   : > { %492 = vmatpush.msra.mxu3 %v1157_v8  ;;  %336 = vmatpush.msra.mxu0 %v299_v9  ;;  %v1165_v15 = vld [vmem:[%s251_s5] sm:$0xff]  ;;  %v1167_v16 = vld [vmem:[%s251_s5 + $0x8] sm:$0xff]  ;;  %s940_s5 = scalar_lea.hbm %s939_s0, 64  ;;  %p945_p7 = scmp.lt.s32.totalorder %s939_s0, %s1366_s4 }
  0x30   : > { %359 = vmatpush.msra.mxu1 %v300_v10  ;;  %470 = vmatpush.msra.mxu2 %v1159_v11  ;;  %v285_v17 = vld [vmem:[%s1364_s2] sm:$0xff]  ;;  %v286_v19 = vld [vmem:[%s1364_s2 + $0x8] sm:$0xff]  ;;  %p941_p4 = scmp.ne.s32.totalorder %s939_s0, %s940_s5  ;;  %p946_p8 = scmp.lt.s32.totalorder %s944_s14, %s940_s5 }
  0x31   : > { %493 = vmatpush.msra.mxu3 %v1161_v12  ;;  %337 = vmatpush.msra.mxu0 %v297_v13  ;;  %v287_v18 = vld [vmem:[%s1365_s3] sm:$0xff]  ;;  %v288_v20 = vld [vmem:[%s1365_s3 + $0x8] sm:$0xff] }
  0x32   : > { %360 = vmatpush.msra.mxu1 %v298_v14  ;;  %471 = vmatpush.msra.mxu2 %v1165_v15  ;;  %p942_p5 = pnand %p941_p4, %p1093_p9  ;;  %p947_p10 = por %p946_p8, %p945_p7 }
  0x33   : > { %494 = vmatpush.msra.mxu3 %v1167_v16  ;;  %735 = vmatmul.msk.f32.vlgmr.msra.gmra.mxu0 %vm315_vm0, %v285_v17 }
  0x34   : > { %737 = vmatmul.msk.f32.vlgmr.msra.gmra.mxu1 %vm315_vm0, %v285_v17  ;;  %743 = vmatmul.msk.f32.vlgmr.msra.gmra.mxu2 %vm315_vm0, %v285_v17  ;;  %p943_p6 = pneg %p942_p5 }
  0x35   : > { %745 = vmatmul.msk.f32.vlgmr.msra.gmra.mxu3 %vm315_vm0, %v285_v17  ;;  %307 = vperm.xlu0 %831, %v287_v18  }
  0x36   : > { %p948_p13 = pnand %p947_p10, %p943_p6 }
  0x3b   : > { %736 = vmatmul.msk.f32.gmra.mxu0 %vm315_vm0, %v286_v19 }
  0x3c   : > { %738 = vmatmul.msk.f32.gmra.mxu1 %vm315_vm0, %v286_v19  ;;  %744 = vmatmul.msk.f32.gmra.mxu2 %vm315_vm0, %v286_v19 }
  0x3d   : > { %746 = vmatmul.msk.f32.gmra.mxu3 %vm315_vm0, %v286_v19  ;;  %312 = vperm.xlu0 %831, %v288_v20  }
  0xa7   : > { %v308_v21 = vpop.permute.xlu0 %307 }
  0xaf   : > { %v313_v28 = vpop.permute.xlu0 %312 }
  0xb0   : > { %v339_v22 = vpop.f32.mrf.mxu0 }
  0xb1   : > { %v362_v23 = vpop.f32.mrf.mxu1  ;;  %v1193_v24 = vadd.f32 %v339_v22, %v308_v21 }
  0xb2   : > { %v1195_v25 = vadd.f32 %v362_v23, %v308_v21 }
  0xb3   : > { %v739_v26 = vmul.f32 -1.442695, %v1193_v24 }
  0xb4   : > { %v740_v27 = vmul.f32 -1.442695, %v1195_v25 }
  0xb5   : > { %832 = vpow2.f32 %v739_v26 }
  0xb6   : > { %834 = vpow2.f32 %v740_v27 }
  0xb7   : > { %v473_v29 = vpop.f32.mrf.mxu2 }
  0xb8   : > { %v496_v30 = vpop.f32.mrf.mxu3  ;;  %v1199_v31 = vadd.f32 %v473_v29, %v308_v21  ;;  %v342_v33 = vpop.f32.mrf.mxu0 }
  0xb9   : > { %v1201_v32 = vadd.f32 %v496_v30, %v308_v21  ;;  %v365_v34 = vpop.f32.mrf.mxu1  ;;  %v1203_v35 = vadd.f32 %v342_v33, %v313_v28 }
  0xba   : > { %v1205_v36 = vadd.f32 %v365_v34, %v313_v28  ;;  %v747_v37 = vmul.f32 -1.442695, %v1199_v31 }
  0xbb   : > { %v748_v38 = vmul.f32 -1.442695, %v1201_v32  ;;  %v833_v39 = vpop.eup %832  ;;  %v741_v42 = vmul.f32 -1.442695, %v1203_v35 }
  0xbc   : > { %v835_v40 = vpop.eup %834  ;;  %v380_v41 = vadd.f32 1.0, %v833_v39  ;;  %836 = vpow2.f32 %v747_v37  ;;  %v742_v44 = vmul.f32 -1.442695, %v1205_v36 }
  0xbd   : > { %v381_v43 = vadd.f32 1.0, %v835_v40  ;;  %838 = vpow2.f32 %v748_v38 }
  0xbe   : > { %840 = vrcp.f32 %v380_v41  ;;  %v393_v51 = vand.u32 2147483647, %v380_v41  ;;  %v395_v52 = vand.u32 2147483648, %v380_v41  ;;  %vm389_vm1 = vweird.f32 %v380_v41 }
  0xbf   : > { %842 = vrcp.f32 %v381_v43  ;;  %v476_v45 = vpop.f32.mrf.mxu2  ;;  %v408_v55 = vand.u32 2147483647, %v381_v43  ;;  %vm404_vm2 = vweird.f32 %v381_v43  ;;  %v410_v62 = vand.u32 2147483648, %v381_v43 }
  0xc0   : > { %v499_v46 = vpop.f32.mrf.mxu3  ;;  %844 = vpow2.f32 %v741_v42  ;;  %v1211_v47 = vadd.f32 %v476_v45, %v313_v28  ;;  %vm1222_vm3 = vcmp.eq.f32.partialorder %v393_v51, 8.507059e+37  ;;  %v396_v5 = vor.u32 1.1754944e-38, %v395_v52 }
  0xc1   : > { %846 = vpow2.f32 %v742_v44  ;;  %v1213_v49 = vadd.f32 %v499_v46, %v313_v28  ;;  %vm1227_vm5 = vcmp.eq.f32.partialorder %v408_v55, 8.507059e+37  ;;  %v411_v19 = vor.u32 1.1754944e-38, %v410_v62 }
  0xc2   : > { %v837_v48 = vpop.eup %836  ;;  %v749_v57 = vmul.f32 -1.442695, %v1211_v47 }
  0xc3   : > { %v839_v50 = vpop.eup %838  ;;  %v1215_v53 = vadd.f32 1.0, %v837_v48  ;;  %v750_v63 = vmul.f32 -1.442695, %v1213_v49 }
  0xc4   : > { %v841_v54 = vpop.eup %840  ;;  %v1217_v56 = vadd.f32 1.0, %v839_v50 }
  0xc5   : > { %v843_v58 = vpop.eup %842  ;;  %v385_v59 = vmul.f32 %v841_v54, %v380_v41  ;;  %848 = vrcp.f32 %v1215_v53  ;;  %vm390_vm4 = vweird.f32 %v841_v54  ;;  %v527_v13 = vand.u32 2147483647, %v1215_v53 }
  0xc6   : > { %v845_v60 = vpop.eup %844  ;;  %v400_v61 = vmul.f32 %v843_v58, %v381_v43  ;;  %850 = vrcp.f32 %v1217_v56  ;;  %vm405_vm6 = vweird.f32 %v843_v58  ;;  %v529_v22 = vand.u32 2147483648, %v1215_v53  ;;  %vm391_vm7 = vmor %vm389_vm1, %vm390_vm4 }
  0xc7   : > { %v847_v0 = vpop.eup %846  ;;  %v386_v1 = vsub.f32 1.0, %v385_v59  ;;  %852 = vpow2.f32 %v749_v57  ;;  %v1232_v14 = vadd.f32 1.0, %v845_v60  ;;  %v542_v23 = vand.u32 2147483647, %v1217_v56  ;;  %vm406_vm10 = vmor %vm404_vm2, %vm405_vm6 }
  0xc8   : > { %v401_v6 = vsub.f32 1.0, %v400_v61  ;;  %v1234_v17 = vadd.f32 1.0, %v847_v0  ;;  %854 = vpow2.f32 %v750_v63  ;;  %vm523_vm8 = vweird.f32 %v1215_v53 }
  0xc9   : > { %v387_v10 = vmul.f32 %v841_v54, %v386_v1  ;;  %856 = vrcp.f32 %v1232_v14  ;;  %vm538_vm9 = vweird.f32 %v1217_v56  ;;  %vm1246_vm11 = vcmp.eq.f32.partialorder %v527_v13, 8.507059e+37 }
  0xca   : > { %v402_v18 = vmul.f32 %v843_v58, %v401_v6  ;;  %v544_v33 = vand.u32 2147483648, %v1217_v56  ;;  %858 = vrcp.f32 %v1234_v17  ;;  %v530_v43 = vor.u32 1.1754944e-38, %v529_v22 }
  0xcb   : > { %v849_v20 = vpop.eup %848  ;;  %v388_v21 = vadd.f32 %v841_v54, %v387_v10  ;;  %vm1258_vm12 = vcmp.eq.f32.partialorder %v542_v23, 8.507059e+37  ;;  %vm419_vm0 = vweird.f32 %v1232_v14  ;;  %v438_v1 = vand.u32 2147483647, %v1234_v17 }
  0xcc   : > { %v403_v26 = vadd.f32 %v843_v58, %v402_v18  ;;  %v519_v27 = vmul.f32 %v849_v20, %v1215_v53  ;;  %v851_v28 = vpop.eup %850  ;;  %vm524_vm13 = vweird.f32 %v849_v20  ;;  %v425_v53 = vand.u32 2147483648, %v1232_v14 }
  0xcd   : > { %v392_v29 = vsel %vm391_vm7, %v841_v54, %v388_v21  ;;  %v853_v34 = vpop.eup %852  ;;  %v534_v40 = vmul.f32 %v851_v28, %v1217_v56  ;;  %vm539_vm14 = vweird.f32 %v851_v28  ;;  %vm525_vm15 = vmor %vm523_vm8, %vm524_vm13  ;;  %v440_v13 = vand.u32 2147483648, %v1234_v17 }
  0xce   : > { %v397_v37 = vsel %vm1222_vm3, %v396_v5, %v392_v29  ;;  %v407_v38 = vsel %vm406_vm10, %v843_v58, %v403_v26  ;;  %v520_v39 = vsub.f32 1.0, %v519_v27  ;;  %v855_v45 = vpop.eup %854  ;;  %v1264_v54 = vadd.f32 1.0, %v853_v34  ;;  %vm540_vm1 = vmor %vm538_vm9, %vm539_vm14 }
  0xcf   : > { %v444_v41 = vmul.f32 %v397_v37, %v1193_v24  ;;  %v412_v42 = vsel %vm1227_vm5, %v411_v19, %v407_v38  ;;  %v535_v50 = vsub.f32 1.0, %v534_v40  ;;  %v857_v51 = vpop.eup %856  ;;  %v545_v24 = vor.u32 1.1754944e-38, %v544_v33 }
  0xd0   : > { %v445_v46 = vmul.f32 %v412_v42, %v1195_v25  ;;  %v521_v48 = vmul.f32 %v849_v20, %v520_v39  ;;  %v415_v59 = vmul.f32 %v857_v51, %v1232_v14  ;;  %v859_v60 = vpop.eup %858  ;;  %860 = vrcp.f32 %v1264_v54 }
  0xd1   : > { %v448_v52 = vadd.f32 %v444_v41, %v1165_v15  ;;  %v536_v58 = vmul.f32 %v851_v28, %v535_v50  ;;  %v423_v15 = vand.u32 2147483647, %v1232_v14  ;;  %v430_v63 = vmul.f32 %v859_v60, %v1234_v17 }
  0xd2   : > { %v449_v55 = vadd.f32 %v445_v46, %v1167_v16  ;;  %v522_v57 = vadd.f32 %v849_v20, %v521_v48  ;;  %v1277_v16 = vadd.f32 1.0, %v855_v45  ;;  %v416_v62 = vsub.f32 1.0, %v415_v59 }
  0xd3   : > { %452 = vst [vmem:[%s1269_s9] sm:$0xff] %v448_v52  ;;  %v537_v61 = vadd.f32 %v851_v28, %v536_v58  ;;  %vm420_vm2 = vweird.f32 %v857_v51  ;;  %v431_v9 = vsub.f32 1.0, %v430_v63  ;;  %vm435_vm3 = vweird.f32 %v859_v60 }
  0xd4   : > { %453 = vst [vmem:[%s1269_s9 + $0x8] sm:$0xff] %v449_v55  ;;  %v526_v25 = vsel %vm525_vm15, %v849_v20, %v522_v57  ;;  %v417_v6 = vmul.f32 %v857_v51, %v416_v62  ;;  %862 = vrcp.f32 %v1277_v16  ;;  %vm421_vm4 = vmor %vm419_vm0, %vm420_vm2  ;;  %vm424_vm5 = vcmp.eq.f32.partialorder %v423_v15, 8.507059e+37 }
  0xd5   : > { %v531_v0 = vsel %vm1246_vm11, %v530_v43, %v526_v25  ;;  %v541_v5 = vsel %vm540_vm1, %v851_v28, %v537_v61  ;;  %v432_v20 = vmul.f32 %v859_v60, %v431_v9  ;;  %v426_v21 = vor.u32 1.1754944e-38, %v425_v53 }
  0xd6   : > { %v578_v2 = vmul.f32 %v531_v0, %v1199_v31  ;;  %v546_v10 = vsel %vm1258_vm12, %v545_v24, %v541_v5  ;;  %v418_v19 = vadd.f32 %v857_v51, %v417_v6  ;;  %v861_v31 = vpop.eup %860  ;;  %vm434_vm6 = vweird.f32 %v1234_v17 }
  0xd7   : > { %v579_v18 = vmul.f32 %v546_v10, %v1201_v32  ;;  %v433_v26 = vadd.f32 %v859_v60, %v432_v20  ;;  %vm436_vm7 = vmor %vm434_vm6, %vm435_vm3  ;;  %v441_v27 = vor.u32 1.1754944e-38, %v440_v13  ;;  %vm439_vm8 = vcmp.eq.f32.partialorder %v438_v1, 8.507059e+37 }
  0xd8   : > { %v582_v56 = vadd.f32 %v578_v2, %v1155_v7  ;;  %v422_v23 = vsel %vm421_vm4, %v857_v51, %v418_v19  ;;  %v549_v7 = vmul.f32 %v861_v31, %v1264_v54  ;;  %vm554_vm9 = vweird.f32 %v861_v31 }
  0xd9   : > { %v583_v22 = vadd.f32 %v579_v18, %v1157_v8  ;;  %v427_v32 = vsel %vm424_vm5, %v426_v21, %v422_v23  ;;  %v437_v28 = vsel %vm436_vm7, %v859_v60, %v433_v26  ;;  %v557_v8 = vand.u32 2147483647, %v1264_v54 }
  0xda   : > { %586 = vst [vmem:[%s1269_s9 + $0x20] sm:$0xff] %v582_v56  ;;  %v446_v14 = vmul.f32 %v427_v32, %v1203_v35  ;;  %v550_v29 = vsub.f32 1.0, %v549_v7  ;;  %v863_v17 = vpop.eup %862  ;;  %v442_v30 = vsel %vm439_vm8, %v441_v27, %v437_v28  ;;  %v559_v33 = vand.u32 2147483648, %v1264_v54 }
  0xdb   : > { %587 = vst [vmem:[%s1269_s9 + $0x28] sm:$0xff] %v583_v22  ;;  %v447_v37 = vmul.f32 %v442_v30, %v1205_v36  ;;  %v564_v39 = vmul.f32 %v863_v17, %v1277_v16  ;;  %vm553_vm10 = vweird.f32 %v1264_v54  ;;  %vm558_vm12 = vcmp.eq.f32.partialorder %v557_v8, 8.507059e+37 }
  0xdc   : > { %v450_v34 = vadd.f32 %v446_v14, %v1159_v11  ;;  %v551_v38 = vmul.f32 %v861_v31, %v550_v29  ;;  %vm555_vm11 = vmor %vm553_vm10, %vm554_vm9  ;;  %v560_v42 = vor.u32 1.1754944e-38, %v559_v33  ;;  %v574_v43 = vand.u32 2147483648, %v1277_v16 }
  0xdd   : > { %v451_v35 = vadd.f32 %v447_v37, %v1161_v12  ;;  %v565_v41 = vsub.f32 1.0, %v564_v39  ;;  %vm569_vm13 = vweird.f32 %v863_v17  ;;  %v572_v44 = vand.u32 2147483647, %v1277_v16 }
  0xde   : > { %454 = vst [vmem:[%s1269_s9 + $0x10] sm:$0xff] %v450_v34  ;;  %v552_v40 = vadd.f32 %v861_v31, %v551_v38  ;;  %vm568_vm14 = vweird.f32 %v1277_v16  ;;  %v575_v48 = vor.u32 1.1754944e-38, %v574_v43 }
  0xdf   : > { %455 = vst [vmem:[%s1269_s9 + $0x18] sm:$0xff] %v451_v35  ;;  %v566_v36 = vmul.f32 %v863_v17, %v565_v41  ;;  %vm570_vm15 = vmor %vm568_vm14, %vm569_vm13  ;;  %vm573_vm0 = vcmp.eq.f32.partialorder %v572_v44, 8.507059e+37 }
  0xe0   : > { %v556_v11 = vsel %vm555_vm11, %v861_v31, %v552_v40 }
  0xe1   : > { %v561_v45 = vsel %vm558_vm12, %v560_v42, %v556_v11  ;;  %v567_v46 = vadd.f32 %v863_v17, %v566_v36 }
  0xe2   : > { %v580_v12 = vmul.f32 %v561_v45, %v1211_v47 }
  0xe3   : > { %v571_v51 = vsel %vm570_vm15, %v863_v17, %v567_v46 }
  0xe4   : > { %v584_v50 = vadd.f32 %v580_v12, %v1149_v3  ;;  %v576_v52 = vsel %vm573_vm0, %v575_v48, %v571_v51 }
  0xe5   : > { %v581_v24 = vmul.f32 %v576_v52, %v1213_v49 }
  0xe6   : > { %588 = vst [vmem:[%s1269_s9 + $0x30] sm:$0xff] %v584_v50 }
  0xe7   : > { %v585_v47 = vadd.f32 %v581_v24, %v1151_v4 }
  0xe9   : > { %589 = vst [vmem:[%s1269_s9 + $0x38] sm:$0xff] %v585_v47 }
  0xea   : > { %951 = shalt.err (!%p948_p13)
}
  0xeb   : > { %s1015_s23 = smov 256   ;;  %s1016_s24 = smov 16  }
  0xec   : > { %763 = dma.vmem_to_hbm [thread:$0]  (%p1093_p9), %s606_s18, 1024, %s608_s7, %s591_s13, %s1015_s23, %s1015_s23, %s1016_s24  }
  0xed PF: > { %s622_s26 = sand.u32 1, %s990_s15   ;;  %p773_p0 = pnand %p724_p12, %p1100_p11 }
  0xee   : > { %s623_s8 = scalar_lea.sflag [#allocation4], %s622_s26 }
  0xef   : > { %p774_p1 = pneg %p773_p0 }
  0xf1   : > { %985 = dma.done.wait (%p774_p1), %s623_s8, 1024  }
  0xf2   : > { %987 = vsyncadd (%p774_p1), %s623_s8, 4294966272  ;;  %s23_s20 = sadd.s32 1, %s1010_s20   ;;  %s1384_s28 = sld [smem:[#allocation11_spill]] }
  0xf3   : > { %p20_p2 = scmp.ge.s32.totalorder %s23_s20, 4   ;;  %s1385_s15 = smov %s994_s16 }
  0xf4   : > { %s1386_s16 = smov %s998_s17  ;;  %s1387_s17 = smov %s1098_s29 }
  0xf5   : > { %s1388_s18 = smov %s1006_s19  ;;  %22 = sbr.rel (!%p20_p2) target bundleno = 10 (0xa), region = 94 }
  0xf8   : > { %s1389_s19 = smov %s1384_s28 }
  0xfa   :  { %629 = vsyncpa [#allocation3], 1 }
  0xfb   :  { %631 = vsyncpa [#allocation3 + $0x1], 1 }
  0xfc   :  { %632 = vsyncpa [#allocation6], 1 }
  0xfd   :  { %634 = vsyncpa [#allocation6 + $0x1], 1 }
  0xfe   :  { %635 = vsyncpa [#allocation4], 1 }
  0xff   :  { %637 = vsyncpa [#allocation4 + $0x1], 1 }

</bundles_post_ra>
